<compile_context>
chip_gen: v6e
topology: v6e:2x2x1
jax: 0.10.0
libtpu: 0.0.40
codegen_flags: <defaults>
</compile_context>

<pallas_src>
import functools

import jax
import jax.numpy as jnp
from jax import lax
from jax.experimental import pallas as pl
from jax.experimental.pallas import tpu as pltpu

LARGE_NUM = 1.0e9   # only used by the pure-JAX reference below
T = 0.5


def _l2_normalize(x):
    x = x.astype(jnp.float32)
    ss = jnp.sum(x * x, axis=1, keepdims=True)
    return x * lax.rsqrt(jnp.maximum(ss, 1e-24))


def _sogclr_kernel(h1k_ref, h2k_ref, u_sel_ref, diag_ref, gamma_ref,
                   loss_ref, u_new_ref, *, tq, b_real):
    Bp = h1k_ref.shape[0]                       # padded batch (key rows)

    row_off = pl.program_id(0) * tq
    if tq % 8 == 0:
        row_off = pl.multiple_of(row_off, tq)

    inv_T = jnp.float32(1.0 / T)
    denom_inv = jnp.float32(1.0 / (2.0 * (b_real - 1)))

    # Keys are pre-normalized bf16, VMEM-resident across the whole grid.
    h1k = h1k_ref[...]                          # (Bp, D) bf16
    h2k = h2k_ref[...]                          # (Bp, D) bf16
    # Query rows: sliced out of the resident key blocks (no duplicate DMA).
    h1q = h1k_ref[pl.ds(row_off, tq), :]        # (tq, D) bf16
    h2q = h2k_ref[pl.ds(row_off, tq), :]        # (tq, D) bf16

    # Negative-pair mask for this row tile: drop the diagonal (positive /
    # self-similarity column) and, if the batch was padded, the padded columns.
    r = lax.broadcasted_iota(jnp.int32, (tq, Bp), 0)
    c = lax.broadcasted_iota(jnp.int32, (tq, Bp), 1)
    neg_ok = c != (r + row_off)
    if Bp != b_real:
        neg_ok = jnp.logical_and(neg_ok, c < b_real)

    dn = (((1,), (1,)), ((), ()))               # NT contraction over D

    def block_sums(q, k):
        # One similarity block at a time: logits -> masked exp -> two row
        # reductions.  Nothing from this block stays live afterwards, which
        # keeps peak VMEM at ~2 live (tq, Bp) f32 tensors.
        logits = lax.dot_general(q, k, dn, preferred_element_type=jnp.float32)
        e = jnp.where(neg_ok, jnp.exp(logits * inv_T), 0.0)
        s = jnp.sum(e, axis=1, keepdims=True)                 # (tq, 1)
        es = jnp.sum(e * logits, axis=1, keepdims=True)       # (tq, 1)
        return s, es

    # a-side (view-1 queries): ab then aa; b-side (view-2 queries): ba then bb.
    # (The 4th matmul is cheaper than two (B,B) XLU transposes on v6e/v7x.)
    s_ab, es_ab = block_sums(h1q, h2k)
    s_aa, es_aa = block_sums(h1q, h1k)
    s_ba, es_ba = block_sums(h2q, h1k)
    s_bb, es_bb = block_sums(h2q, h2k)

    u_sel = u_sel_ref[...]                      # (tq, 1) f32
    diag = diag_ref[...]                        # (tq, 1) f32, <h1_i, h2_i>
    gamma = gamma_ref[0, 0]

    # Moving-average denominators (u1, u2) and their mean (the new u state).
    u1 = (1.0 - gamma) * u_sel + gamma * ((s_ab + s_aa) * denom_inv)
    u2 = (1.0 - gamma) * u_sel + gamma * ((s_ba + s_bb) * denom_inv)
    u_new_ref[...] = ((u1 + u2) * 0.5).reshape(1, tq)

    # 1/u folded into the weighted-logit reductions (no BxB divides).
    inv_u1 = pl.reciprocal(u1, approx=True)
    inv_u2 = pl.reciprocal(u2, approx=True)
    es1 = (es_ab + es_aa) * denom_inv * inv_u1
    es2 = (es_ba + es_bb) * denom_inv * inv_u2

    # loss_a + loss_b per query row (mean taken in the wrapper).
    loss_ref[...] = ((es1 - diag) + (es2 - diag)).reshape(1, tq)


def _vmem_capacity_bytes():
    try:
        return int(pltpu.get_tpu_info().vmem_capacity_bytes)
    except Exception:
        return 64 * 1024 * 1024     # conservative (v7x-sized) fallback


def _pick_tiling(B, vmem_cap_bytes):
    """Return (tq, padded_B).  MXU-aligned tiles; pad B when not divisible."""
    if B <= 256:
        return B, B                               # single full-extent tile
    # v7x (64 MiB VMEM / TC): keep the (tq, B) intermediates small -> tq=128.
    # v5e: 128x128 MXU -> tq=128 is already optimal.  v6e: tq=256 is fine.
    max_tq = 128 if vmem_cap_bytes <= 64 * 1024 * 1024 else 256
    for t in (max_tq, 128):
        if B % t == 0:
            return t, B
    tq = 128
    return tq, ((B + tq - 1) // tq) * tq          # pad; masked in-kernel


def sogclr_forward(hidden, u_state, index, gamma=0.9):
    """SogCLR.forward (distributed=False). Returns (loss, updated_u_state)."""
    # TODO(synk): distributed=True path (all_gather_layer / concat_all_gather) not implemented.
    twoB, D = hidden.shape
    B = twoB // 2

    # One-shot prologue (was per-grid-step work before): F.normalize in f32,
    # bf16 keys for the MXU, f32 positive-pair diagonal.
    h1n = _l2_normalize(hidden[:B])
    h2n = _l2_normalize(hidden[B:])
    diag = jnp.sum(h1n * h2n, axis=1, keepdims=True)          # (B, 1) f32
    h1b = h1n.astype(jnp.bfloat16)
    h2b = h2n.astype(jnp.bfloat16)

    u_sel = u_state[index].astype(jnp.float32).reshape(B, 1)  # gather (glue)
    # "if self.u[index].sum() == 0: gamma = 1" is a global batch condition,
    # resolved here and fed to the kernel as an SMEM scalar.
    gamma_eff = jnp.where(jnp.sum(u_sel) == 0.0, jnp.float32(1.0),
                          jnp.float32(gamma)).reshape(1, 1)

    cap = _vmem_capacity_bytes()
    tq, Bp = _pick_tiling(B, cap)
    num_tiles = Bp // tq

    if Bp != B:
        pad = Bp - B
        h1b = jnp.pad(h1b, ((0, pad), (0, 0)))
        h2b = jnp.pad(h2b, ((0, pad), (0, 0)))
        diag = jnp.pad(diag, ((0, pad), (0, 0)))
        u_sel_in = jnp.pad(u_sel, ((0, pad), (0, 0)))
    else:
        u_sel_in = u_sel

    # VMEM budget: ~48 MiB on 64 MiB parts (v7x), ~96 MiB on 128 MiB parts.
    vmem_limit = int(max(32 * 1024 * 1024,
                         min(cap * 3 // 4, 100 * 1024 * 1024)))

    kernel = functools.partial(_sogclr_kernel, tq=tq, b_real=B)

    loss_rows, u_new = pl.pallas_call(
        kernel,
        out_shape=(
            jax.ShapeDtypeStruct((1, Bp), jnp.float32),   # per-row loss_a+loss_b
            jax.ShapeDtypeStruct((1, Bp), jnp.float32),   # updated u[index]
        ),
        grid_spec=pltpu.PrefetchScalarGridSpec(
            num_scalar_prefetch=0,
            grid=(num_tiles,),
            in_specs=[
                pl.BlockSpec((Bp, D), lambda i: (0, 0)),             # h1 keys (bf16, resident)
                pl.BlockSpec((Bp, D), lambda i: (0, 0)),             # h2 keys (bf16, resident)
                pl.BlockSpec((tq, 1), lambda i: (i, 0)),             # u[index] rows
                pl.BlockSpec((tq, 1), lambda i: (i, 0)),             # f32 diag rows
                pl.BlockSpec(memory_space=pltpu.MemorySpace.SMEM),   # gamma scalar
            ],
            out_specs=(
                pl.BlockSpec((1, tq), lambda i: (0, i)),
                pl.BlockSpec((1, tq), lambda i: (0, i)),
            ),
        ),
        compiler_params=pltpu.CompilerParams(
            dimension_semantics=("parallel",),
            vmem_limit_bytes=vmem_limit,
        ),
    )(h1b, h2b, u_sel_in, diag, gamma_eff)

    loss = jnp.mean(loss_rows[0, :B])                                 # tiny glue reduce
    u_state = u_state.at[index].set(
        u_new[0, :B].reshape(B, 1).astype(u_state.dtype))
    return loss, u_state


def _sogclr_reference(hidden, u_state, index, gamma=0.9):
    """Pure-JAX (f32) transcription of the PyTorch forward, for checking."""
    twoB, _ = hidden.shape
    B = twoB // 2
    h1 = hidden[:B].astype(jnp.float32)
    h2 = hidden[B:].astype(jnp.float32)
    h1 = h1 / jnp.maximum(jnp.linalg.norm(h1, axis=1, keepdims=True), 1e-12)
    h2 = h2 / jnp.maximum(jnp.linalg.norm(h2, axis=1, keepdims=True), 1e-12)
    eye = jnp.eye(B, dtype=jnp.float32)
    labels = jnp.concatenate([eye, jnp.zeros((B, B), jnp.float32)], axis=1)
    logits_aa = h1 @ h1.T - eye * LARGE_NUM
    logits_bb = h2 @ h2.T - eye * LARGE_NUM
    logits_ab = h1 @ h2.T
    logits_ba = h2 @ h1.T
    neg_mask = 1.0 - labels
    logits_ab_aa = jnp.concatenate([logits_ab, logits_aa], axis=1)
    logits_ba_bb = jnp.concatenate([logits_ba, logits_bb], axis=1)
    neg1 = jnp.exp(logits_ab_aa / T) * neg_mask
    neg2 = jnp.exp(logits_ba_bb / T) * neg_mask
    u_sel = u_state[index].astype(jnp.float32).reshape(B, 1)
    g = jnp.where(jnp.sum(u_sel) == 0.0, 1.0, gamma)
    denom = 2.0 * (B - 1)
    u1 = (1 - g) * u_sel + g * jnp.sum(neg1, axis=1, keepdims=True) / denom
    u2 = (1 - g) * u_sel + g * jnp.sum(neg2, axis=1, keepdims=True) / denom
    u_new = (u1 + u2) / 2
    w1 = neg1 / u1
    w2 = neg2 / u2
    es1 = jnp.sum(w1 * logits_ab_aa, axis=1, keepdims=True) / denom
    es2 = jnp.sum(w2 * logits_ba_bb, axis=1, keepdims=True) / denom
    loss_a = -jnp.sum(labels * (logits_ab_aa - es1), axis=1)
    loss_b = -jnp.sum(labels * (logits_ba_bb - es2), axis=1)
    loss = jnp.mean(loss_a + loss_b)
    u_state = u_state.at[index].set(u_new)
    return loss, u_state


if __name__ == "__main__":
    key = jax.random.PRNGKey(0)
    B, D, N = 8, 128, 64                      # batch pairs, hidden dim, dataset size

    hidden = jax.random.normal(key, (2 * B, D), dtype=jnp.float32)
    u_state0 = jnp.zeros((N, 1), dtype=jnp.float32)   # SogCLR.__init__: u = zeros(N, 1)
    index = jnp.arange(B, dtype=jnp.int32)

    # First call: exercises the gamma = 1 (u[index].sum() == 0) path.
    loss1, u_state1 = sogclr_forward(hidden, u_state0, index, gamma=0.9)
    loss1 = jax.block_until_ready(loss1)
    u_state1 = jax.block_until_ready(u_state1)
    ref_loss1, ref_u1 = _sogclr_reference(hidden, u_state0, index, gamma=0.9)

    assert jnp.isfinite(loss1), "loss is not finite"
    assert jnp.allclose(loss1, ref_loss1, rtol=2e-2, atol=2e-2), (loss1, ref_loss1)
    assert jnp.allclose(u_state1, ref_u1, rtol=2e-2, atol=2e-2)

    # Second call: exercises the gamma-blend path (u[index] no longer zero).
    loss2, u_state2 = sogclr_forward(hidden, u_state1, index, gamma=0.9)
    loss2 = jax.block_until_ready(loss2)
    u_state2 = jax.block_until_ready(u_state2)
    ref_loss2, ref_u2 = _sogclr_reference(hidden, u_state1, index, gamma=0.9)

    assert jnp.isfinite(loss2), "loss is not finite"
    assert jnp.allclose(loss2, ref_loss2, rtol=2e-2, atol=2e-2), (loss2, ref_loss2)
    assert jnp.allclose(u_state2, ref_u2, rtol=2e-2, atol=2e-2)

    print("KERNEL_OK")
</pallas_src>

<mosaic_0001>
module attributes {stable_mosaic.version = 11 : i64} {
  func.func @_sogclr_kernel(%arg0: i32, %arg1: memref<8x128xbf16, #tpu.memory_space<vmem>>, %arg2: memref<8x128xbf16, #tpu.memory_space<vmem>>, %arg3: memref<8x1xf32, #tpu.memory_space<vmem>>, %arg4: memref<8x1xf32, #tpu.memory_space<vmem>>, %arg5: memref<1x1xf32, #tpu.memory_space<smem>>, %arg6: memref<1x8xf32, #tpu.memory_space<vmem>>, %arg7: memref<1x8xf32, #tpu.memory_space<vmem>>) attributes {dimension_semantics = [#tpu.dimension_semantics<parallel>], iteration_bounds = array<i64: 1>, scalar_prefetch = 0 : i64, scratch_operands = 0 : i64, tpu.core_type = #tpu.core_type<tc>, window_params = [{pipeline_mode = #tpu.pipeline_mode<synchronous>, transform_indices = @transform_0, window_bounds = array<i64: 8, 128>}, {pipeline_mode = #tpu.pipeline_mode<synchronous>, transform_indices = @transform_1, window_bounds = array<i64: 8, 128>}, {transform_indices = @transform_2, window_bounds = array<i64: 8, 1>}, {transform_indices = @transform_3, window_bounds = array<i64: 8, 1>}, {transform_indices = @transform_4, window_bounds = array<i64: 1, 1>}, {transform_indices = @transform_5, window_bounds = array<i64: 1, 8>}, {transform_indices = @transform_6, window_bounds = array<i64: 1, 8>}]} {
    %c8_i32 = arith.constant 8 : i32
    %0 = arith.muli %arg0, %c8_i32 : i32
    %1 = tpu.assume_multiple %0, 8 : i32
    %c0 = arith.constant 0 : index
    %c0_0 = arith.constant 0 : index
    %2 = vector.load %arg1[%c0, %c0_0] : memref<8x128xbf16, #tpu.memory_space<vmem>>, vector<8x128xbf16>
    %c0_1 = arith.constant 0 : index
    %c0_2 = arith.constant 0 : index
    %3 = vector.load %arg2[%c0_1, %c0_2] : memref<8x128xbf16, #tpu.memory_space<vmem>>, vector<8x128xbf16>
    %4 = arith.index_cast %1 : i32 to index
    %c0_3 = arith.constant 0 : index
    %5 = vector.load %arg1[%4, %c0_3] : memref<8x128xbf16, #tpu.memory_space<vmem>>, vector<8x128xbf16>
    %6 = arith.index_cast %1 : i32 to index
    %c0_4 = arith.constant 0 : index
    %7 = vector.load %arg2[%6, %c0_4] : memref<8x128xbf16, #tpu.memory_space<vmem>>, vector<8x128xbf16>
    %8 = tpu.iota {dimensions = array<i32: 0>} : vector<8x8xi32>
    %9 = tpu.iota {dimensions = array<i32: 1>} : vector<8x8xi32>
    %10 = vector.broadcast %1 : i32 to vector<8x8xi32>
    %11 = arith.addi %8, %10 : vector<8x8xi32>
    %12 = arith.cmpi ne, %9, %11 : vector<8x8xi32>
    %cst = arith.constant dense<0.000000e+00> : vector<8x8xf32>
    %13 = tpu.matmul %5, %3, %cst {dimension_numbers = #tpu.dot_dimension_numbers<[1], [1], [0], [0], [0, 0, 1, 0], [], []>} : vector<8x128xbf16>, vector<8x128xbf16>, vector<8x8xf32> -> vector<8x8xf32>
    %cst_5 = arith.constant 2.000000e+00 : f32
    %14 = vector.broadcast %cst_5 : f32 to vector<8x8xf32>
    %15 = arith.mulf %13, %14 : vector<8x8xf32>
    %16 = math.exp %15 : vector<8x8xf32>
    %cst_6 = arith.constant 0.000000e+00 : f32
    %17 = vector.broadcast %cst_6 : f32 to vector<8x8xf32>
    %18 = arith.select %12, %16, %17 : vector<8x8xi1>, vector<8x8xf32>
    %cst_7 = arith.constant dense<0.000000e+00> : vector<8xf32>
    %19 = vector.multi_reduction <add>, %18, %cst_7 [1] : vector<8x8xf32> to vector<8xf32>
    %20 = vector.shape_cast %19 : vector<8xf32> to vector<8x1xf32>
    %21 = arith.mulf %18, %13 : vector<8x8xf32>
    %cst_8 = arith.constant dense<0.000000e+00> : vector<8xf32>
    %22 = vector.multi_reduction <add>, %21, %cst_8 [1] : vector<8x8xf32> to vector<8xf32>
    %23 = vector.shape_cast %22 : vector<8xf32> to vector<8x1xf32>
    %cst_9 = arith.constant dense<0.000000e+00> : vector<8x8xf32>
    %24 = tpu.matmul %5, %2, %cst_9 {dimension_numbers = #tpu.dot_dimension_numbers<[1], [1], [0], [0], [0, 0, 1, 0], [], []>} : vector<8x128xbf16>, vector<8x128xbf16>, vector<8x8xf32> -> vector<8x8xf32>
    %cst_10 = arith.constant 2.000000e+00 : f32
    %25 = vector.broadcast %cst_10 : f32 to vector<8x8xf32>
    %26 = arith.mulf %24, %25 : vector<8x8xf32>
    %27 = math.exp %26 : vector<8x8xf32>
    %cst_11 = arith.constant 0.000000e+00 : f32
    %28 = vector.broadcast %cst_11 : f32 to vector<8x8xf32>
    %29 = arith.select %12, %27, %28 : vector<8x8xi1>, vector<8x8xf32>
    %cst_12 = arith.constant dense<0.000000e+00> : vector<8xf32>
    %30 = vector.multi_reduction <add>, %29, %cst_12 [1] : vector<8x8xf32> to vector<8xf32>
    %31 = vector.shape_cast %30 : vector<8xf32> to vector<8x1xf32>
    %32 = arith.mulf %29, %24 : vector<8x8xf32>
    %cst_13 = arith.constant dense<0.000000e+00> : vector<8xf32>
    %33 = vector.multi_reduction <add>, %32, %cst_13 [1] : vector<8x8xf32> to vector<8xf32>
    %34 = vector.shape_cast %33 : vector<8xf32> to vector<8x1xf32>
    %cst_14 = arith.constant dense<0.000000e+00> : vector<8x8xf32>
    %35 = tpu.matmul %7, %2, %cst_14 {dimension_numbers = #tpu.dot_dimension_numbers<[1], [1], [0], [0], [0, 0, 1, 0], [], []>} : vector<8x128xbf16>, vector<8x128xbf16>, vector<8x8xf32> -> vector<8x8xf32>
    %cst_15 = arith.constant 2.000000e+00 : f32
    %36 = vector.broadcast %cst_15 : f32 to vector<8x8xf32>
    %37 = arith.mulf %35, %36 : vector<8x8xf32>
    %38 = math.exp %37 : vector<8x8xf32>
    %cst_16 = arith.constant 0.000000e+00 : f32
    %39 = vector.broadcast %cst_16 : f32 to vector<8x8xf32>
    %40 = arith.select %12, %38, %39 : vector<8x8xi1>, vector<8x8xf32>
    %cst_17 = arith.constant dense<0.000000e+00> : vector<8xf32>
    %41 = vector.multi_reduction <add>, %40, %cst_17 [1] : vector<8x8xf32> to vector<8xf32>
    %42 = vector.shape_cast %41 : vector<8xf32> to vector<8x1xf32>
    %43 = arith.mulf %40, %35 : vector<8x8xf32>
    %cst_18 = arith.constant dense<0.000000e+00> : vector<8xf32>
    %44 = vector.multi_reduction <add>, %43, %cst_18 [1] : vector<8x8xf32> to vector<8xf32>
    %45 = vector.shape_cast %44 : vector<8xf32> to vector<8x1xf32>
    %cst_19 = arith.constant dense<0.000000e+00> : vector<8x8xf32>
    %46 = tpu.matmul %7, %3, %cst_19 {dimension_numbers = #tpu.dot_dimension_numbers<[1], [1], [0], [0], [0, 0, 1, 0], [], []>} : vector<8x128xbf16>, vector<8x128xbf16>, vector<8x8xf32> -> vector<8x8xf32>
    %cst_20 = arith.constant 2.000000e+00 : f32
    %47 = vector.broadcast %cst_20 : f32 to vector<8x8xf32>
    %48 = arith.mulf %46, %47 : vector<8x8xf32>
    %49 = math.exp %48 : vector<8x8xf32>
    %cst_21 = arith.constant 0.000000e+00 : f32
    %50 = vector.broadcast %cst_21 : f32 to vector<8x8xf32>
    %51 = arith.select %12, %49, %50 : vector<8x8xi1>, vector<8x8xf32>
    %cst_22 = arith.constant dense<0.000000e+00> : vector<8xf32>
    %52 = vector.multi_reduction <add>, %51, %cst_22 [1] : vector<8x8xf32> to vector<8xf32>
    %53 = vector.shape_cast %52 : vector<8xf32> to vector<8x1xf32>
    %54 = arith.mulf %51, %46 : vector<8x8xf32>
    %cst_23 = arith.constant dense<0.000000e+00> : vector<8xf32>
    %55 = vector.multi_reduction <add>, %54, %cst_23 [1] : vector<8x8xf32> to vector<8xf32>
    %56 = vector.shape_cast %55 : vector<8xf32> to vector<8x1xf32>
    %c0_24 = arith.constant 0 : index
    %c0_25 = arith.constant 0 : index
    %57 = vector.load %arg3[%c0_24, %c0_25] : memref<8x1xf32, #tpu.memory_space<vmem>>, vector<8x1xf32>
    %c0_26 = arith.constant 0 : index
    %c0_27 = arith.constant 0 : index
    %58 = vector.load %arg4[%c0_26, %c0_27] : memref<8x1xf32, #tpu.memory_space<vmem>>, vector<8x1xf32>
    %c0_28 = arith.constant 0 : index
    %c0_29 = arith.constant 0 : index
    %59 = memref.load %arg5[%c0_28, %c0_29] : memref<1x1xf32, #tpu.memory_space<smem>>
    %cst_30 = arith.constant 1.000000e+00 : f32
    %60 = arith.subf %cst_30, %59 : f32
    %61 = vector.broadcast %60 : f32 to vector<8x1xf32>
    %62 = arith.mulf %61, %57 : vector<8x1xf32>
    %63 = arith.addf %20, %31 : vector<8x1xf32>
    %cst_31 = arith.constant 0.0714285746 : f32
    %64 = vector.broadcast %cst_31 : f32 to vector<8x1xf32>
    %65 = arith.mulf %63, %64 : vector<8x1xf32>
    %66 = vector.broadcast %59 : f32 to vector<8x1xf32>
    %67 = arith.mulf %66, %65 : vector<8x1xf32>
    %68 = arith.addf %62, %67 : vector<8x1xf32>
    %cst_32 = arith.constant 1.000000e+00 : f32
    %69 = arith.subf %cst_32, %59 : f32
    %70 = vector.broadcast %69 : f32 to vector<8x1xf32>
    %71 = arith.mulf %70, %57 : vector<8x1xf32>
    %72 = arith.addf %42, %53 : vector<8x1xf32>
    %cst_33 = arith.constant 0.0714285746 : f32
    %73 = vector.broadcast %cst_33 : f32 to vector<8x1xf32>
    %74 = arith.mulf %72, %73 : vector<8x1xf32>
    %75 = vector.broadcast %59 : f32 to vector<8x1xf32>
    %76 = arith.mulf %75, %74 : vector<8x1xf32>
    %77 = arith.addf %71, %76 : vector<8x1xf32>
    %78 = arith.addf %68, %77 : vector<8x1xf32>
    %cst_34 = arith.constant 5.000000e-01 : f32
    %79 = vector.broadcast %cst_34 : f32 to vector<8x1xf32>
    %80 = arith.mulf %78, %79 : vector<8x1xf32>
    %81 = vector.shape_cast %80 : vector<8x1xf32> to vector<1x8xf32>
    %c0_35 = arith.constant 0 : index
    %c0_36 = arith.constant 0 : index
    %82 = vector.load %arg7[%c0_35, %c0_36] : memref<1x8xf32, #tpu.memory_space<vmem>>, vector<1x8xf32>
    tpu.vector_store %arg7[%c0_35, %c0_36], %81 {strides = array<i32>} : memref<1x8xf32, #tpu.memory_space<vmem>>, vector<1x8xf32>,
    %83 = tpu.reciprocal %68 {approx = true} : vector<8x1xf32> -> vector<8x1xf32>
    %84 = tpu.reciprocal %77 {approx = true} : vector<8x1xf32> -> vector<8x1xf32>
    %85 = arith.addf %23, %34 : vector<8x1xf32>
    %cst_37 = arith.constant 0.0714285746 : f32
    %86 = vector.broadcast %cst_37 : f32 to vector<8x1xf32>
    %87 = arith.mulf %85, %86 : vector<8x1xf32>
    %88 = arith.mulf %87, %83 : vector<8x1xf32>
    %89 = arith.addf %45, %56 : vector<8x1xf32>
    %cst_38 = arith.constant 0.0714285746 : f32
    %90 = vector.broadcast %cst_38 : f32 to vector<8x1xf32>
    %91 = arith.mulf %89, %90 : vector<8x1xf32>
    %92 = arith.mulf %91, %84 : vector<8x1xf32>
    %93 = arith.subf %88, %58 : vector<8x1xf32>
    %94 = arith.subf %92, %58 : vector<8x1xf32>
    %95 = arith.addf %93, %94 : vector<8x1xf32>
    %96 = vector.shape_cast %95 : vector<8x1xf32> to vector<1x8xf32>
    %c0_39 = arith.constant 0 : index
    %c0_40 = arith.constant 0 : index
    %97 = vector.load %arg6[%c0_39, %c0_40] : memref<1x8xf32, #tpu.memory_space<vmem>>, vector<1x8xf32>
    tpu.vector_store %arg6[%c0_39, %c0_40], %96 {strides = array<i32>} : memref<1x8xf32, #tpu.memory_space<vmem>>, vector<1x8xf32>,
    return
  }
  func.func @transform_0(%arg0: i32) -> (i32, i32) {
    %c0_i32 = arith.constant 0 : i32
    %c0_i32_0 = arith.constant 0 : i32
    %c0_i32_1 = arith.constant 0 : i32
    return %c0_i32, %c0_i32_0 : i32, i32
  }
  func.func @transform_1(%arg0: i32) -> (i32, i32) {
    %c0_i32 = arith.constant 0 : i32
    %c0_i32_0 = arith.constant 0 : i32
    %c0_i32_1 = arith.constant 0 : i32
    return %c0_i32, %c0_i32_0 : i32, i32
  }
  func.func @transform_2(%arg0: i32) -> (i32, i32) {
    %c0_i32 = arith.constant 0 : i32
    %c0_i32_0 = arith.constant 0 : i32
    return %arg0, %c0_i32 : i32, i32
  }
  func.func @transform_3(%arg0: i32) -> (i32, i32) {
    %c0_i32 = arith.constant 0 : i32
    %c0_i32_0 = arith.constant 0 : i32
    return %arg0, %c0_i32 : i32, i32
  }
  func.func @transform_4(%arg0: i32) -> (i32, i32) {
    %c0_i32 = arith.constant 0 : i32
    %c0_i32_0 = arith.constant 0 : i32
    %c0_i32_1 = arith.constant 0 : i32
    return %c0_i32, %c0_i32_0 : i32, i32
  }
  func.func @transform_5(%arg0: i32) -> (i32, i32) {
    %c0_i32 = arith.constant 0 : i32
    %c0_i32_0 = arith.constant 0 : i32
    return %c0_i32, %arg0 : i32, i32
  }
  func.func @transform_6(%arg0: i32) -> (i32, i32) {
    %c0_i32 = arith.constant 0 : i32
    %c0_i32_0 = arith.constant 0 : i32
    return %c0_i32, %arg0 : i32, i32
  }
}

</mosaic_0001>

<bundles_post_ra>
// kernel: tpu_custom_call.1
= control target key start
LH: loop header
LB: loop body
LE: loop exit
PB: predicated region body
PF: predicated region fallthrough
CT: control target
= control target key end

     0   :  { %13 = vsyncpa [#allocation4], 0  ;;  %v425_v2 = vmov 0.0   ;;  %s525_s0 = inlined_call_operand.vmem [shape: bf16[8,128], index: 0, kind: input, shape index: {}]   ;;  %s526_s1 = inlined_call_operand.vmem [shape: bf16[8,128], index: 1, kind: input, shape index: {}]   ;;  %s527_s2 = inlined_call_operand.vmem [shape: f32[8,1], index: 2, kind: input, shape index: {}]   ;;  %s528_s3 = inlined_call_operand.vmem [shape: f32[8,1], index: 3, kind: input, shape index: {}]   ;;  %s529_s4 = inlined_call_operand.<no memory space> [shape: f32[1,1], index: 4, kind: input, shape index: {}]   ;;  %s530_s5 = inlined_call_operand.hbm [shape: f32[1,8], index: 5, kind: output, shape index: {0}]   ;;  %s531_s6 = inlined_call_operand.hbm [shape: f32[1,8], index: 6, kind: output, shape index: {1}]  }
   0x1   :  { %v28_v0 = vld [vmem:[%s526_s1] sm:$0xf]  ;;  %338 = vmatprep.subr.bf16.mxu0 %v425_v2  ;;  %344 = vmatprep.subr.bf16.mxu1 %v425_v2 }
   0x2   :  { %v27_v1 = vld [vmem:[%s525_s0] sm:$0xf] }
   0x3   :  { %14 = vsyncpa [#allocation6], 0  ;;  %339 = vmatpush3.bf16.xpose.msra.mxu0 %v28_v0  ;;  %345 = vmatpush3.bf16.xpose.msra.mxu1 %v27_v1  ;;  %vm426_vm0 = vmmov 0   ;;  %v33_v3 = vld [vmem:[%s525_s0] sm:$0xf]  ;;  %v37_v19 = vlaneseq  ;;  %vm88_vm2 = vcmask 64512   ;;  %v257_v58 = vstv %s529_s4 }
   0x4   :  { %340 = vmatprep.mubr.msk.bf16.mxu0 %vm426_vm0, %v425_v2  ;;  %346 = vmatprep.mubr.msk.bf16.mxu1 %vm426_vm0, %v425_v2  ;;  %v36_v4 = vld [vmem:[%s526_s1] sm:$0xf]  ;;  %v427_v52 = vmov 0   ;;  %s252_s29 = ssub.f32 1.0, %s529_s4  ;;  %s428_s10 = smov [#allocation5]   ;;  %vm275_vm3 = vcmask 57344  }
   0x5   :  { %350 = vmatprep.subr.bf16.mxu0 %v425_v2  ;;  %356 = vmatprep.subr.bf16.mxu1 %v425_v2  ;;  %v477_v28 = vshrl.u32 %v37_v19, 7  ;;  %v479_v29 = vand.u32 127, %v37_v19  ;;  %v249_v56 = vld [vmem:[%s527_s2] sm:$0xff]  ;;  %s314_s11 = sshll.u32 %s428_s10, 4  ;;  %s315_s11 = int_to_ptr.vmem [resolvable:$true] %s314_s11 }
   0x6   :  { %367 = vset.pattern.permute.xlu0 %v427_v52  ;;  %368 = vset.pattern.permute.xlu1 %v427_v52  ;;  %v253_v57 = vstv %s252_s29  ;;  %s381_s12 = scalar_lea.vmem %s315_s11, 16  ;;  %s385_s13 = scalar_lea.vmem %s315_s11, 32 }
   0x7   :  { %vm43_vm1 = vcmp.ne.s32.totalorder %v479_v29, %v477_v28  ;;  %v254_v61 = vmul.f32 %v253_v57, %v249_v56  ;;  %p382_p0 = scmp.ne.s32.totalorder %s315_s11, %s381_s12  ;;  %p386_p1 = scmp.lt.s32.totalorder %s315_s11, %s315_s11 }
   0x8   :  { %p387_p2 = scmp.lt.s32.totalorder %s385_s13, %s381_s12 }
   0xa   :  { %341 = vmatmul.mubr.bf16.vlgmr.msra.gmra.mxu0 %v33_v3  ;;  %347 = vmatmul.mubr.bf16.vlgmr.msra.gmra.mxu1 %v33_v3  ;;  %p388_p3 = por %p387_p2, %p386_p1 }
   0xb   :  { %351 = vmatpush3.bf16.xpose.msra.mxu0 %v27_v1  ;;  %357 = vmatpush3.bf16.xpose.msra.mxu1 %v28_v0 }
   0xc   :  { %352 = vmatprep.mubr.msk.bf16.mxu0 %vm426_vm0, %v425_v2  ;;  %358 = vmatprep.mubr.msk.bf16.mxu1 %vm426_vm0, %v425_v2  ;;  %p389_p4 = pnand %p388_p3, %p382_p0 }
  0x12   :  { %353 = vmatmul.mubr.bf16.vlgmr.msra.gmra.mxu0 %v36_v4  ;;  %359 = vmatmul.mubr.bf16.vlgmr.msra.gmra.mxu1 %v36_v4 }
  0xca   :  { %v78_v5 = vpop.f32.mrf.mxu0  ;;  %v130_v6 = vpop.f32.mrf.mxu1 }
  0xcb   :  { %v84_v7 = vmul.f32 2.0, %v78_v5  ;;  %v136_v8 = vmul.f32 2.0, %v130_v6 }
  0xcc   :  { %v342_v9 = vpop.f32.mrf.mxu0  ;;  %v348_v10 = vpop.f32.mrf.mxu1 }
  0xcd   :  { %v85_v11 = vmul.f32 1.442695, %v84_v7  ;;  %v137_v12 = vmul.f32 1.442695, %v136_v8 }
  0xce   :  { %v81_v13 = vpop.f32.mrf.mxu0  ;;  %v133_v14 = vpop.f32.mrf.mxu1 }
  0xcf   :  { %369 = vpow2.f32 %v85_v11 }
  0xd0   :  { %371 = vpow2.f32 %v137_v12  ;;  %v343_v15 = vpop.f32.mrf.mxu0  ;;  %v349_v16 = vpop.f32.mrf.mxu1 }
  0xd2   :  { %v181_v17 = vpop.f32.mrf.mxu0  ;;  %v232_v18 = vpop.f32.mrf.mxu1 }
  0xd3   :  { %v187_v20 = vmul.f32 2.0, %v181_v17  ;;  %v238_v21 = vmul.f32 2.0, %v232_v18 }
  0xd4   :  { %v354_v22 = vpop.f32.mrf.mxu0  ;;  %v360_v23 = vpop.f32.mrf.mxu1 }
  0xd5   :  { %v188_v24 = vmul.f32 1.442695, %v187_v20  ;;  %v239_v25 = vmul.f32 1.442695, %v238_v21  ;;  %v272_v23 = vsub.s32 %v479_v29, %v477_v28 }
  0xd6   :  { %v184_v26 = vpop.f32.mrf.mxu0  ;;  %v235_v27 = vpop.f32.mrf.mxu1 }
  0xd7   :  { %373 = vpow2.f32 %v188_v24 }
  0xd8   :  { %375 = vpow2.f32 %v239_v25  ;;  %v355_v30 = vpop.f32.mrf.mxu0  ;;  %v361_v31 = vpop.f32.mrf.mxu1 }
  0xdc   :  { %v370_v32 = vpop.eup %369 }
  0xdd   :  { %v372_v33 = vpop.eup %371  ;;  %v87_v34 = vsel %vm43_vm1, %v370_v32, 0.0 }
  0xde   :  { %v89_v35 = vsel %vm88_vm2, %v87_v34, 0.0  ;;  %v139_v36 = vsel %vm43_vm1, %v372_v33, 0.0  ;;  %v92_v38 = vmul.f32 %v87_v34, %v78_v5 }
  0xdf   :  { %90 = vadd.xlane.f32.xlu0 %v89_v35  ;;  %v140_v37 = vsel %vm88_vm2, %v139_v36, 0.0  ;;  %v143_v48 = vmul.f32 %v139_v36, %v130_v6 }
  0xe0   :  { %v93_v44 = vsel %vm88_vm2, %v92_v38, 0.0 }
  0xe1   :  { %v144_v49 = vsel %vm88_vm2, %v143_v48, 0.0 }
  0xe3   :  { %141 = vadd.xlane.f32.xlu0 %v140_v37 }
  0xe4   :  { %v374_v39 = vpop.eup %373 }
  0xe5   :  { %v376_v40 = vpop.eup %375  ;;  %v190_v41 = vsel %vm43_vm1, %v374_v39, 0.0 }
  0xe6   :  { %v191_v42 = vsel %vm88_vm2, %v190_v41, 0.0  ;;  %v194_v43 = vmul.f32 %v190_v41, %v181_v17  ;;  %v241_v45 = vsel %vm43_vm1, %v376_v40, 0.0 }
  0xe7   :  { %192 = vadd.xlane.f32.xlu1 %v191_v42  ;;  %94 = vadd.xlane.f32.xlu0 %v93_v44  ;;  %v242_v46 = vsel %vm88_vm2, %v241_v45, 0.0  ;;  %v245_v50 = vmul.f32 %v241_v45, %v232_v18  ;;  %v250_v18 = vld [vmem:[%s528_s3] sm:$0xff] }
  0xe8   :  { %v195_v47 = vsel %vm88_vm2, %v194_v43, 0.0 }
  0xe9   :  { %v246_v51 = vsel %vm88_vm2, %v245_v50, 0.0 }
  0xeb   :  { %196 = vadd.xlane.f32.xlu0 %v195_v47  ;;  %243 = vadd.xlane.f32.xlu1 %v242_v46 }
  0xef   :  { %145 = vadd.xlane.f32.xlu1 %v144_v49 }
  0xf3   :  { %247 = vadd.xlane.f32.xlu1 %v246_v51 }
 0x168   :  { %v91_v53 = vpop.xlane.xlu0 %90 }
 0x16c   :  { %v142_v54 = vpop.xlane.xlu0 %141 }
 0x16d   :  { %v255_v55 = vadd.f32 %v142_v54, %v91_v53 }
 0x16f   :  { %v256_v59 = vmul.f32 0.071428575, %v255_v55 }
 0x170   :  { %v193_v60 = vpop.xlane.xlu1 %192  ;;  %v95_v7 = vpop.xlane.xlu0 %94 }
 0x171   :  { %v258_v62 = vmul.f32 %v257_v58, %v256_v59 }
 0x173   :  { %v259_v0 = vadd.f32 %v258_v62, %v254_v61 }
 0x174   :  { %v244_v63 = vpop.xlane.xlu1 %243  ;;  %v197_v11 = vpop.xlane.xlu0 %196 }
 0x175   :  { %v260_v1 = vadd.f32 %v244_v63, %v193_v60  ;;  %377 = vrcp.f32 %v259_v0 }
 0x177   :  { %v261_v2 = vmul.f32 0.071428575, %v260_v1 }
 0x178   :  { %v146_v5 = vpop.xlane.xlu1 %145 }
 0x179   :  { %v262_v3 = vmul.f32 %v261_v2, %v257_v58  ;;  %v279_v10 = vadd.f32 %v146_v5, %v95_v7 }
 0x17b   :  { %v263_v4 = vadd.f32 %v262_v3, %v254_v61  ;;  %v280_v14 = vmul.f32 0.071428575, %v279_v10 }
 0x17c   :  { %v248_v9 = vpop.xlane.xlu1 %247 }
 0x17d   :  { %379 = vrcp.f32 %v263_v4  ;;  %v264_v6 = vadd.f32 %v263_v4, %v259_v0  ;;  %v282_v12 = vadd.f32 %v248_v9, %v197_v11 }
 0x17f   :  { %v265_v8 = vmul.f32 0.5, %v264_v6  ;;  %v283_v16 = vmul.f32 0.071428575, %v282_v12 }
 0x181   :  { %268 = vperm.xlu0 %367, %v265_v8  }
 0x182   :  { %v378_v13 = vpop.eup %377 }
 0x183   :  { %v281_v15 = vmul.f32 %v378_v13, %v280_v14 }
 0x185   :  { %v285_v20 = vsub.f32 %v281_v15, %v250_v18 }
 0x18a   :  { %v380_v17 = vpop.eup %379 }
 0x18b   :  { %v284_v19 = vmul.f32 %v380_v17, %v283_v16 }
 0x18d   :  { %v286_v21 = vsub.f32 %v284_v19, %v250_v18 }
 0x18f   :  { %v287_v22 = vadd.f32 %v286_v21, %v285_v20 }
 0x191   :  { %290 = vperm.xlu1 %368, %v287_v22  }
 0x1fc   :  { %v269_v24 = vpop.permute.xlu0 %268 }
 0x1fd   :  { %v273_v25 = vrot.slane %v269_v24, %v272_v23 }
 0x1ff   :  { %276 = vst.msk [vmem:[#allocation5] sm:$0x1] %vm275_vm3, %v273_v25 }
 0x200   :  { %392 = shalt.err (!%p389_p4)
}
 0x201   :  { %317 = dma.vmem_to_hbm [thread:$0]  %s315_s11, 16, %s531_s6, [#allocation6]  }
 0x202   :  { %s429_s15 = smov [#allocation3]  }
 0x203   :  { %s304_s16 = sshll.u32 %s429_s15, 4  ;;  %s305_s16 = int_to_ptr.vmem [resolvable:$true] %s304_s16 }
 0x204   :  { %s401_s17 = scalar_lea.vmem %s305_s16, 16  ;;  %s405_s18 = scalar_lea.vmem %s305_s16, 32 }
 0x205   :  { %p402_p5 = scmp.ne.s32.totalorder %s305_s16, %s401_s17  ;;  %p406_p6 = scmp.lt.s32.totalorder %s305_s16, %s305_s16 }
 0x206   :  { %p407_p7 = scmp.lt.s32.totalorder %s405_s18, %s401_s17 }
 0x208   :  { %p408_p8 = por %p407_p7, %p406_p6 }
 0x20a   :  { %p409_p9 = pnand %p408_p8, %p402_p5 }
 0x20c   :  { %v291_v26 = vpop.permute.xlu1 %290 }
 0x20d   :  { %v295_v27 = vrot.slane %v291_v26, %v272_v23 }
 0x20f   :  { %297 = vst.msk [vmem:[#allocation3] sm:$0x1] %vm275_vm3, %v295_v27 }
 0x210   :  { %412 = shalt.err (!%p409_p9)
}
 0x211   :  { %307 = dma.vmem_to_hbm [thread:$0]  %s305_s16, 16, %s530_s5, [#allocation4]  }
 0x212   :  { %421 = dma.done.wait [#allocation4], 16  }
 0x213   :  { %422 = vsyncadd [#allocation4], 4294967280 }
 0x214   :  { %423 = dma.done.wait [#allocation6], 16  }
 0x215   :  { %424 = vsyncadd [#allocation6], 4294967280 }
 0x216   :  { %324 = vsyncpa [#allocation4], 1 }
 0x217   :  { %325 = vsyncpa [#allocation6], 1 }

</bundles_post_ra>
